<compile_context>
chip_gen: v6e
topology: v6e:2x2x1
jax: 0.10.0
libtpu: 0.0.40
codegen_flags: <defaults>
</compile_context>

<pallas_src>
import functools

import jax
import jax.numpy as jnp
from jax import lax
from jax.experimental import pallas as pl
from jax.experimental.pallas import tpu as pltpu


def _round_up(x, m):
    return (x + m - 1) // m * m


def _padded_block_bytes(shape, dtype):
    """VMEM bytes of a block after (sublane, 128) tiling of the last two dims
    (sublane tile scales with packing: 8 for 4-byte, 16 for 2-byte dtypes)."""
    itemsize = jnp.dtype(dtype).itemsize
    if len(shape) < 2:
        return _round_up(int(shape[0]) if shape else 1, 128) * itemsize
    sub = 8 * (4 // itemsize)
    lead = 1
    for d in shape[:-2]:
        lead *= int(d)
    return lead * _round_up(int(shape[-2]), sub) * _round_up(int(shape[-1]), 128) * itemsize


def _pick_row_tile(Ho, Wo, O, itemsize, budget=8 << 20):
    """Largest output row-tile TH that divides Ho with TH % 8 == 0 (or
    TH == Ho) whose (TH, Wo*O) output block fits the budget.  Small outputs
    intentionally collapse to TH == Ho (fewer grid steps, less per-step
    overhead); divisor-based picking avoids out-of-bounds halo reads."""
    candidates = [th for th in range(Ho, 0, -1)
                  if Ho % th == 0 and (th % 8 == 0 or th == Ho)]
    for th in candidates:
        if th * _round_up(Wo * O, 128) * itemsize <= budget:
            return th
    return candidates[-1]


def prepare_weight(weight_oihw, W, padding=0, mxu_dtype=None):
    """One-time (init-style) weight prep: fold the conv taps into a banded
    'width-matricized' matrix M of shape (KH, Wp*Cin, Wo*O) such that
        out[h, w*O + o] = sum_kh  x_fold[h+kh, :] @ M[kh]
    with x_fold the (Hp, Wp*Cin) lane-folded padded image."""
    O, Cin, KH, KW = weight_oihw.shape
    Wp = W + 2 * padding
    Wo = Wp - KW + 1
    # (KH, KW, Cin, O) -> rows ordered (kw, cin), then shift by w*Cin per
    # output column block: M[kh, (w+kw)*Cin + c, w*O + o] = weight[o, c, kh, kw]
    w = jnp.transpose(weight_oihw, (2, 3, 1, 0)).reshape(KH, KW * Cin, O)
    w = jnp.pad(w, ((0, 0), (0, (Wp - KW) * Cin), (0, 0)))        # (KH, Wp*Cin, O)
    cols = [jnp.roll(w, shift=wi * Cin, axis=1) for wi in range(Wo)]
    banded = jnp.stack(cols, axis=2).reshape(KH, Wp * Cin, Wo * O)
    if mxu_dtype is not None:
        banded = banded.astype(mxu_dtype)
    return banded


# -----------------------------------------------------------------------------
# Pallas kernel: one (batch, output-row-tile) step.
#   x_ref : (1, Hp, Wp*Cin)      lane-folded padded image (resident per batch)
#   w_ref : (KH, Wp*Cin, Wo*O)   banded weights (resident)
#   o_ref : (1, TH, Wo*O)        lane-dense folded-NHWC output tile
# KH contiguous row-slab matmuls accumulated in f32 vregs; no relayouts, no
# VMEM accumulator, one store per tile.
# -----------------------------------------------------------------------------
def _conv_kernel(x_ref, w_ref, o_ref, *, KH, TH):
    i = pl.program_id(1)
    h0 = pl.multiple_of(i * TH, TH)
    acc = jnp.dot(x_ref[0, pl.ds(h0, TH), :], w_ref[0],
                  preferred_element_type=jnp.float32)
    for kh in range(1, KH):                      # static, tiny
        acc = acc + jnp.dot(x_ref[0, pl.ds(h0 + kh, TH), :], w_ref[kh],
                            preferred_element_type=jnp.float32)
    o_ref[0] = acc.astype(o_ref.dtype)


def sparse_graph_conv2d(x_nchw, weight_oihw, *, stride=1, padding=0, dilation=1,
                        groups=1, mxu_dtype=None, banded_weight=None):
    """Forward pass of SparseGraphConv2d (weights already masked)."""
    # TODO(synk): only stride=1, dilation=1, groups=1 implemented (module defaults).
    assert stride == 1 and dilation == 1 and groups == 1

    N, Cin, H, W = x_nchw.shape
    O, Ci, KH, KW = weight_oihw.shape
    assert Ci == Cin
    Hp, Wp = H + 2 * padding, W + 2 * padding
    Ho, Wo = Hp - KH + 1, Wp - KW + 1

    if banded_weight is None:                    # normally hoisted to init
        banded_weight = prepare_weight(weight_oihw, W, padding, mxu_dtype)

    # ---- activations: NCHW -> padded NHWC -> fold (W, Cin) into lanes -------
    # TODO(synk): keep activations NHWC/folded end-to-end in a real pipeline;
    # the module contract here is NCHW so one transpose+pad pass remains.
    x = jnp.transpose(x_nchw, (0, 2, 3, 1))
    if padding:
        x = jnp.pad(x, ((0, 0), (padding, padding), (padding, padding), (0, 0)))
    x = x.reshape(N, Hp, Wp * Cin)
    if x.dtype != banded_weight.dtype:           # one-time wrapper cast (bf16 path)
        x = x.astype(banded_weight.dtype)

    out_dtype = x_nchw.dtype
    TH = _pick_row_tile(Ho, Wo, O, jnp.dtype(out_dtype).itemsize)
    HT = Ho // TH

    # ---- VMEM budget from padded block sizes + chip capacity ----------------
    x_blk = _padded_block_bytes((1, Hp, Wp * Cin), x.dtype)
    w_blk = _padded_block_bytes(banded_weight.shape, banded_weight.dtype)
    o_blk = _padded_block_bytes((1, TH, Wo * O), out_dtype)
    need = 2 * (x_blk + w_blk + o_blk) + (4 << 20)
    try:
        cap = getattr(pltpu.get_tpu_info(), "vmem_capacity_bytes", 64 << 20)
    except Exception:
        cap = 64 << 20
    vmem_limit = int(min(max(need, 32 << 20), int(cap * 0.85)))

    kernel = functools.partial(_conv_kernel, KH=KH, TH=TH)

    out = pl.pallas_call(
        kernel,
        out_shape=jax.ShapeDtypeStruct((N, Ho, Wo * O), out_dtype),
        grid_spec=pltpu.PrefetchScalarGridSpec(
            num_scalar_prefetch=0,
            grid=(N, HT),
            in_specs=[
                # Full folded image; index ignores the row-tile axis so it
                # stays resident in VMEM across the inner grid steps.
                pl.BlockSpec((1, Hp, Wp * Cin), lambda n, i: (n, 0, 0)),
                # Banded weights, fetched once and kept resident.
                pl.BlockSpec(banded_weight.shape, lambda n, i: (0, 0, 0)),
            ],
            out_specs=pl.BlockSpec((1, TH, Wo * O), lambda n, i: (n, i, 0)),
        ),
        compiler_params=pltpu.CompilerParams(
            dimension_semantics=("parallel", "parallel"),
            vmem_limit_bytes=vmem_limit),
    )(x, banded_weight)

    # Folded NHWC -> NCHW to match the PyTorch module output (unpadded bytes;
    # the old 16x lane-padded readback is gone).
    out = out.reshape(N, Ho, Wo, O)
    return jnp.transpose(out, (0, 3, 1, 2))


# -----------------------------------------------------------------------------
# Parameter construction (deterministic, in-script).
# -----------------------------------------------------------------------------
def build_mask(in_channels, out_channels, degree, kernel_size):
    # TODO(synk): graph_factory / networkx bipartite graph generation not
    # replicated; use a deterministic degree-regular bipartite connectivity.
    mask = jnp.zeros((out_channels, in_channels), jnp.float32)
    for o in range(out_channels):
        for d in range(degree):
            mask = mask.at[o, (o + d) % in_channels].set(1.0)
    mask = mask[:, :, None, None]
    return jnp.broadcast_to(
        mask, (out_channels, in_channels, kernel_size, kernel_size))


def init_masked_weight(key, in_channels, out_channels, kernel_size, mask):
    # PyTorch Conv2d default init: kaiming_uniform(a=sqrt(5))
    #   -> U(-1/sqrt(fan_in), 1/sqrt(fan_in)), fan_in = Cin * kh * kw
    fan_in = in_channels * kernel_size * kernel_size
    bound = 1.0 / jnp.sqrt(jnp.float32(fan_in))
    w = jax.random.uniform(
        key, (out_channels, in_channels, kernel_size, kernel_size),
        dtype=jnp.float32, minval=-bound, maxval=bound)
    return w * mask  # mask applied at initialization, as in the module


if __name__ == "__main__":
    batch, in_channels, out_channels = 2, 4, 8
    H = W = 16
    kernel_size, degree, padding = 3, 2, 1

    key = jax.random.PRNGKey(0)
    kx, kw = jax.random.split(key)

    x = jax.random.normal(kx, (batch, in_channels, H, W), dtype=jnp.float32)
    mask = build_mask(in_channels, out_channels, degree, kernel_size)
    weight = init_masked_weight(kw, in_channels, out_channels, kernel_size, mask)

    # One-time (init) weight prep, hoisted out of the forward call.
    banded_f32 = prepare_weight(weight, W, padding)
    out = sparse_graph_conv2d(x, weight, padding=padding,
                              banded_weight=banded_f32)
    out = jax.block_until_ready(out)

    # Correctness check against XLA's conv (f32 MXU path).
    ref = lax.conv_general_dilated(
        x, weight, window_strides=(1, 1),
        padding=[(padding, padding), (padding, padding)],
        dimension_numbers=("NCHW", "OIHW", "NCHW"))
    assert out.shape == ref.shape == (batch, out_channels, H, W)
    assert jnp.allclose(out, ref, atol=1e-4, rtol=1e-4)

    # bf16 MXU path: activations cast once in the wrapper, f32 accumulation.
    banded_bf16 = prepare_weight(weight, W, padding, mxu_dtype=jnp.bfloat16)
    out_bf16 = jax.block_until_ready(
        sparse_graph_conv2d(x, weight, padding=padding,
                            mxu_dtype=jnp.bfloat16, banded_weight=banded_bf16))
    assert jnp.allclose(out_bf16, ref, atol=5e-2, rtol=5e-2)

    print("KERNEL_OK")
</pallas_src>

<mosaic_0001>
module attributes {stable_mosaic.version = 11 : i64} {
  func.func @_conv_kernel(%arg0: i32, %arg1: i32, %arg2: memref<1x18x72xf32, #tpu.memory_space<vmem>>, %arg3: memref<3x72x128xf32, #tpu.memory_space<vmem>>, %arg4: memref<1x16x128xf32, #tpu.memory_space<vmem>>) attributes {dimension_semantics = [#tpu.dimension_semantics<parallel>, #tpu.dimension_semantics<parallel>], iteration_bounds = array<i64: 2, 1>, scalar_prefetch = 0 : i64, scratch_operands = 0 : i64, tpu.core_type = #tpu.core_type<tc>, window_params = [{transform_indices = @transform_0, window_bounds = array<i64: 1, 18, 72>}, {pipeline_mode = #tpu.pipeline_mode<synchronous>, transform_indices = @transform_1, window_bounds = array<i64: 3, 72, 128>}, {transform_indices = @transform_2, window_bounds = array<i64: 1, 16, 128>}]} {
    %c16_i32 = arith.constant 16 : i32
    %0 = arith.muli %arg1, %c16_i32 : i32
    %1 = tpu.assume_multiple %0, 16 : i32
    %c0 = arith.constant 0 : index
    %2 = arith.index_cast %1 : i32 to index
    %c0_0 = arith.constant 0 : index
    %3 = vector.load %arg2[%c0, %2, %c0_0] : memref<1x18x72xf32, #tpu.memory_space<vmem>>, vector<1x16x72xf32>
    %4 = vector.shape_cast %3 : vector<1x16x72xf32> to vector<16x72xf32>
    %c0_1 = arith.constant 0 : index
    %c0_2 = arith.constant 0 : index
    %c0_3 = arith.constant 0 : index
    %5 = vector.load %arg3[%c0_1, %c0_2, %c0_3] : memref<3x72x128xf32, #tpu.memory_space<vmem>>, vector<1x72x128xf32>
    %6 = vector.shape_cast %5 : vector<1x72x128xf32> to vector<72x128xf32>
    %cst = arith.constant dense<0.000000e+00> : vector<16x128xf32>
    %7 = tpu.matmul %4, %6, %cst {dimension_numbers = #tpu.dot_dimension_numbers<[1], [0], [0], [1], [0, 0, 1, 1], [], []>} : vector<16x72xf32>, vector<72x128xf32>, vector<16x128xf32> -> vector<16x128xf32>
    %c1_i32 = arith.constant 1 : i32
    %8 = arith.addi %1, %c1_i32 : i32
    %c0_4 = arith.constant 0 : index
    %9 = arith.index_cast %8 : i32 to index
    %c0_5 = arith.constant 0 : index
    %10 = vector.load %arg2[%c0_4, %9, %c0_5] : memref<1x18x72xf32, #tpu.memory_space<vmem>>, vector<1x16x72xf32>
    %11 = vector.shape_cast %10 : vector<1x16x72xf32> to vector<16x72xf32>
    %c1 = arith.constant 1 : index
    %c0_6 = arith.constant 0 : index
    %c0_7 = arith.constant 0 : index
    %12 = vector.load %arg3[%c1, %c0_6, %c0_7] : memref<3x72x128xf32, #tpu.memory_space<vmem>>, vector<1x72x128xf32>
    %13 = vector.shape_cast %12 : vector<1x72x128xf32> to vector<72x128xf32>
    %cst_8 = arith.constant dense<0.000000e+00> : vector<16x128xf32>
    %14 = tpu.matmul %11, %13, %cst_8 {dimension_numbers = #tpu.dot_dimension_numbers<[1], [0], [0], [1], [0, 0, 1, 1], [], []>} : vector<16x72xf32>, vector<72x128xf32>, vector<16x128xf32> -> vector<16x128xf32>
    %15 = arith.addf %7, %14 : vector<16x128xf32>
    %c2_i32 = arith.constant 2 : i32
    %16 = arith.addi %1, %c2_i32 : i32
    %c0_9 = arith.constant 0 : index
    %17 = arith.index_cast %16 : i32 to index
    %c0_10 = arith.constant 0 : index
    %18 = vector.load %arg2[%c0_9, %17, %c0_10] : memref<1x18x72xf32, #tpu.memory_space<vmem>>, vector<1x16x72xf32>
    %19 = vector.shape_cast %18 : vector<1x16x72xf32> to vector<16x72xf32>
    %c2 = arith.constant 2 : index
    %c0_11 = arith.constant 0 : index
    %c0_12 = arith.constant 0 : index
    %20 = vector.load %arg3[%c2, %c0_11, %c0_12] : memref<3x72x128xf32, #tpu.memory_space<vmem>>, vector<1x72x128xf32>
    %21 = vector.shape_cast %20 : vector<1x72x128xf32> to vector<72x128xf32>
    %cst_13 = arith.constant dense<0.000000e+00> : vector<16x128xf32>
    %22 = tpu.matmul %19, %21, %cst_13 {dimension_numbers = #tpu.dot_dimension_numbers<[1], [0], [0], [1], [0, 0, 1, 1], [], []>} : vector<16x72xf32>, vector<72x128xf32>, vector<16x128xf32> -> vector<16x128xf32>
    %23 = arith.addf %15, %22 : vector<16x128xf32>
    %c0_14 = arith.constant 0 : index
    %c0_15 = arith.constant 0 : index
    %c0_16 = arith.constant 0 : index
    %24 = vector.load %arg4[%c0_14, %c0_15, %c0_16] : memref<1x16x128xf32, #tpu.memory_space<vmem>>, vector<1x16x128xf32>
    %25 = vector.shape_cast %24 : vector<1x16x128xf32> to vector<16x128xf32>
    %26 = vector.shape_cast %23 : vector<16x128xf32> to vector<1x16x128xf32>
    tpu.vector_store %arg4[%c0_14, %c0_15, %c0_16], %26 {strides = array<i32>} : memref<1x16x128xf32, #tpu.memory_space<vmem>>, vector<1x16x128xf32>,
    return
  }
  func.func @transform_0(%arg0: i32, %arg1: i32) -> (i32, i32, i32) {
    %c0_i32 = arith.constant 0 : i32
    %c0_i32_0 = arith.constant 0 : i32
    %c0_i32_1 = arith.constant 0 : i32
    return %arg0, %c0_i32, %c0_i32_0 : i32, i32, i32
  }
  func.func @transform_1(%arg0: i32, %arg1: i32) -> (i32, i32, i32) {
    %c0_i32 = arith.constant 0 : i32
    %c0_i32_0 = arith.constant 0 : i32
    %c0_i32_1 = arith.constant 0 : i32
    %c0_i32_2 = arith.constant 0 : i32
    return %c0_i32, %c0_i32_0, %c0_i32_1 : i32, i32, i32
  }
  func.func @transform_2(%arg0: i32, %arg1: i32) -> (i32, i32, i32) {
    %c0_i32 = arith.constant 0 : i32
    %c0_i32_0 = arith.constant 0 : i32
    return %arg0, %arg1, %c0_i32 : i32, i32, i32
  }
}

</mosaic_0001>

<bundles_post_ra>
// kernel: tpu_custom_call.1
= control target key start
LH: loop header
LB: loop body
LE: loop exit
PB: predicated region body
PF: predicated region fallthrough
CT: control target
= control target key end

     0   :  { %7 = vsyncpa [#allocation3], 0  ;;  %s1042_s0 = inlined_call_operand.vmem [shape: f32[2,18,72], index: 0, kind: input, shape index: {}]   ;;  %s1043_s1 = inlined_call_operand.hbm [shape: f32[3,72,128], index: 1, kind: input, shape index: {}]   ;;  %s1044_s2 = inlined_call_operand.hbm [shape: f32[2,16,128], index: 2, kind: output, shape index: {}]  }
   0x1   :  { %8 = vsyncpa [#allocation4], 0 }
   0x2   :  { %10 = vsyncpa [#allocation4 + $0x1], 0  ;;  %s891_s9 = smov 0   ;;  %s893_s10 = smov 0  }
   0x3   :  { %s895_s11 = smov 0   ;;  %s897_s12 = smov 0  }
   0x4   :  { %s899_s13 = smov 0   ;;  %s901_s14 = smov 0  }
   0x5 LB: > { %s570_s15 = sadd.s32 4294967295, %s868_s14   ;;  %s571_s16 = sadd.s32 4294967294, %s868_s14   ;;  %s868_s14 = sphi %s901_s14, %s16_s14   ;;  %s864_s13 = sphi %s899_s13, %s1053_s13   ;;  %s860_s12 = sphi %s897_s12, %s1052_s12   ;;  %s856_s11 = sphi %s895_s11, %s1051_s11   ;;  %s852_s10 = sphi %s893_s10, %s1050_s10   ;;  %s848_s9 = sphi %s891_s9, %s1049_s9  }
   0x6   : > { %s28_s17 = sadd.s32 1, %s864_s13  ;;  %s84_s18 = sadd.s32 1, %s856_s11 }
   0x7   : > { %p30_p0 = scmp.ge.s32.totalorder %s28_s17, 2  ;;  %p94_p1 = scmp.ne.s32.totalorder %s856_s11, %s852_s10 }
   0x8   : > { %p95_p2 = scmp.eq.s32.totalorder %s570_s15, 1  ;;  %p100_p3 = scmp.ne.s32.totalorder %s852_s10, %s848_s9 }
   0x9   : > { %s1055_s17 = smov (%p30_p0, %s28_s17), 0  ;;  %p101_p5 = scmp.eq.s32.totalorder %s571_s16, 1 }
   0xa   : > { %p931_p4 = por %p95_p2, %p94_p1  ;;  %s79_s20 = ssub.s32 %s864_s13, %s1055_s17 }
   0xb   : > { %p572_p6 = scmp.ge.s32.totalorder %s868_s14, 1  ;;  %p82_p7 = scmp.eq.s32.totalorder %s79_s20, 0 }
   0xc   : > { %p938_p8 = por %p101_p5, %p100_p3  ;;  %p108_p9 = scmp.lt.s32.totalorder %s868_s14, 3 }
   0xd   : > { %s944_s22 = scalar_select %p82_p7, %s856_s11, %s84_s18  }
   0xe   : > { %p946_p10 = pnand %p572_p6, %p108_p9  ;;  %p950_p11 = scmp.eq.s32.totalorder %s570_s15, 0 }
   0xf   : > { %s870_s25 = smov [#allocation2]  }
  0x10   : > { %p698_p12 = pneg %p946_p10  ;;  %s120_s26 = sshll.u32 %s870_s25, 4  ;;  %s121_s26 = int_to_ptr.vmem [resolvable:$true] %s120_s26 }
  0x11   : > { %s773_s27 = scalar_lea.vmem %s121_s26, 3456  ;;  %p781_p5 = scmp.lt.s32.totalorder %s121_s26, %s121_s26 }
  0x12   : > { %p699_p13 = pnand %p950_p11, %p698_p12  ;;  %p774_p1 = scmp.ne.s32.totalorder %s121_s26, %s773_s27 }
  0x13   : > { %p782_p6 = scmp.lt.s32.totalorder %s773_s27, %s773_s27 }
  0x14   : > { %p764_p0 = pneg %p699_p13 }
  0x15   : > { %p783_p7 = por %p782_p6, %p781_p5 }
  0x16   : > { %p776_p2 = pnand %p774_p1, %p764_p0 }
  0x18   : > { %p777_p3 = pneg %p776_p2 }
  0x1a   : > { %p784_p9 = pnand %p783_p7, %p777_p3 }
  0x1c   : > { %787 = shalt.err (!%p784_p9)
}
  0x1d   : > { %s871_s28 = smov 128   ;;  %s872_s29 = smov 8  }
  0x1e   : > { %701 = dma.hbm_to_vmem [thread:$0]  (!%p699_p13), %s1043_s1, 3456, %s121_s26, [#allocation3], %s871_s28, %s871_s28, %s872_s29  }
  0x1f   : > { %144 = sbr.rel (%p946_p10) target bundleno = 287 (0x11f), region = 28 }
  0x24   : > { %839 = dma.done.wait (%p950_p11), [#allocation3], 3456  }
  0x25   : > { %841 = vsyncadd (%p950_p11), [#allocation3], 4294963840  ;;  %v198_v0 = vld [vmem:[#allocation2 + $0x88] sm:$0xff]  ;;  %v184_v1 = vld [vmem:[#allocation2 + $0x40] sm:$0xff]  ;;  %p166_p12 = scmp.lt.s32.totalorder %s860_s12, 1  ;;  %vm199_vm0 = vcmask 588800  }
  0x26   : > { %v197_v2 = vld [vmem:[#allocation2 + $0x80] sm:$0xff]  ;;  %628 = vmatprep.subr.mxu0 %v198_v0  ;;  %649 = vmatprep.subr.mxu1 %v184_v1  ;;  %v183_v3 = vld [vmem:[#allocation2 + $0x38] sm:$0xff]  ;;  %v182_v5 = vld [vmem:[#allocation2 + $0x30] sm:$0xff]  ;;  %s163_s15 = sand.u32 1, %s852_s10   ;;  %s594_s23 = sshll.u32 %s860_s12, 8 }
  0x27   : > { %629 = vmatpush3.msra.mxu0 %v198_v0  ;;  %650 = vmatpush3.msra.mxu1 %v184_v1  ;;  %v196_v4 = vld [vmem:[#allocation2 + $0x78] sm:$0xff]  ;;  %v195_v6 = vld [vmem:[#allocation2 + $0x70] sm:$0xff]  ;;  %v181_v7 = vld [vmem:[#allocation2 + $0x28] sm:$0xff]  ;;  %s167_s4 = scalar_select %p166_p12, %s860_s12, 1 }
  0x28   : > { %630 = vmatprep.subr.mxu0 %v197_v2  ;;  %651 = vmatprep.subr.mxu1 %v183_v3  ;;  %v194_v8 = vld [vmem:[#allocation2 + $0x68] sm:$0xff]  ;;  %v180_v9 = vld [vmem:[#allocation2 + $0x20] sm:$0xff]  ;;  %v179_v11 = vld [vmem:[#allocation2 + $0x18] sm:$0xff]  ;;  %s577_s16 = sshll.u32 %s163_s15, 4  ;;  %s995_s26 = scalar_lea.hbm %s1044_s2, %s594_s23 }
  0x29   : > { %631 = vmatpush3.msra.mxu0 %v197_v2  ;;  %652 = vmatpush3.msra.mxu1 %v183_v3  ;;  %v193_v10 = vld [vmem:[#allocation2 + $0x60] sm:$0xff]  ;;  %s691_s5 = smul.u32 24, %s167_s4  ;;  %v192_v12 = vld [vmem:[#allocation2 + $0x58] sm:$0xff]  ;;  %v178_v13 = vld [vmem:[#allocation2 + $0x10] sm:$0xff]  ;;  %s165_s18 = scalar_lea.vmem [#allocation5], %s577_s16 }
  0x2a   : > { %632 = vmatprep.subr.mxu0 %v196_v4  ;;  %653 = vmatprep.subr.mxu1 %v182_v5  ;;  %v191_v14 = vld [vmem:[#allocation2 + $0x50] sm:$0xff]  ;;  %v177_v15 = vld [vmem:[#allocation2 + $0x8] sm:$0xff]  ;;  %v176_v17 = vld [vmem:[#allocation2] sm:$0xff]  ;;  %s477_s20 = sshll.u32 %s165_s18, 4  ;;  %s997_s27 = scalar_lea.sflag [#allocation4], %s163_s15  ;;  %s990_s20 = int_to_ptr.vmem [resolvable:$true] %s477_s20 }
  0x2b   : > { %633 = vmatpush3.msra.mxu0 %v196_v4  ;;  %654 = vmatpush3.msra.mxu1 %v182_v5  ;;  %s974_s8 = scalar_lea.vmem %s1042_s0, %s691_s5  ;;  %v190_v16 = vld [vmem:[#allocation2 + $0x48] sm:$0xff]  ;;  %v375_v22 = vld [vmem:[#allocation2 + $0xd0] sm:$0xff]  ;;  %v373_v25 = vld [vmem:[#allocation2 + $0xc0] sm:$0xff]  ;;  %s788_s12 = scalar_lea.vmem %s990_s20, 256 }
  0x2c   : > { %634 = vmatprep.subr.mxu0 %v195_v6  ;;  %655 = vmatprep.subr.mxu1 %v181_v7  ;;  %v579_v18 = vld [vmem:[%s974_s8 + $0x1] sm:$0xff]  ;;  %v580_v20 = vld [vmem:[%s974_s8 + $0x9] sm:$0xff]  ;;  %v372_v26 = vld [vmem:[#allocation2 + $0xb8] sm:$0xff]  ;;  %p789_p10 = scmp.ne.s32.totalorder %s990_s20, %s788_s12  ;;  %s873_s28 = smov [#allocation5]  }
  0x2d   : > { %635 = vmatpush3.msra.mxu0 %v195_v6  ;;  %656 = vmatpush3.msra.mxu1 %v181_v7  ;;  %v174_v19 = vld [vmem:[%s974_s8] sm:$0xff]  ;;  %v175_v21 = vld [vmem:[%s974_s8 + $0x8] sm:$0xff]  ;;  %v371_v27 = vld [vmem:[#allocation2 + $0xb0] sm:$0xff]  ;;  %s792_s29 = sshll.u32 %s873_s28, 4  ;;  %s793_s29 = int_to_ptr.vmem [resolvable:$false] %s792_s29 }
  0x2e   : > { %636 = vmatprep.subr.mxu0 %v194_v8  ;;  %657 = vmatprep.subr.mxu1 %v180_v9  ;;  %v585_v23 = vld [vmem:[%s974_s8 + $0x2] sm:$0xff]  ;;  %v368_v30 = vld [vmem:[#allocation2 + $0x98] sm:$0xff]  ;;  %v367_v31 = vld [vmem:[#allocation2 + $0x90] sm:$0xff]  ;;  %p790_p11 = pnand %p789_p10, %p931_p4  ;;  %s794_s30 = scalar_lea.vmem %s793_s29, 512 }
  0x2f   : > { %637 = vmatpush3.msra.mxu0 %v194_v8  ;;  %658 = vmatpush3.msra.mxu1 %v180_v9  ;;  %v374_v24 = vld [vmem:[#allocation2 + $0xc8] sm:$0xff]  ;;  %v369_v29 = vld [vmem:[#allocation2 + $0xa0] sm:$0xff]  ;;  %p795_p0 = scmp.lt.s32.totalorder %s990_s20, %s793_s29  ;;  %p796_p1 = scmp.lt.s32.totalorder %s794_s30, %s788_s12 }
  0x30   : > { %638 = vmatprep.subr.mxu0 %v193_v10  ;;  %659 = vmatprep.subr.mxu1 %v179_v11  ;;  %v370_v28 = vld [vmem:[#allocation2 + $0xa8] sm:$0xff]  ;;  %p791_p13 = pneg %p790_p11 }
  0x31   : > { %639 = vmatpush3.msra.mxu0 %v193_v10  ;;  %660 = vmatpush3.msra.mxu1 %v179_v11  ;;  %v586_v32 = vld [vmem:[%s974_s8 + $0xa] sm:$0xff]  ;;  %p797_p2 = por %p796_p1, %p795_p0 }
  0x32   : > { %640 = vmatprep.subr.mxu0 %v192_v12  ;;  %661 = vmatprep.subr.mxu1 %v178_v13 }
  0x33   : > { %641 = vmatpush3.msra.mxu0 %v192_v12  ;;  %662 = vmatpush3.msra.mxu1 %v178_v13  ;;  %p798_p3 = pnand %p797_p2, %p791_p13 }
  0x34   : > { %642 = vmatprep.subr.mxu0 %v191_v14  ;;  %663 = vmatprep.subr.mxu1 %v177_v15 }
  0x35   : > { %643 = vmatpush3.msra.mxu0 %v191_v14  ;;  %664 = vmatpush3.msra.mxu1 %v177_v15 }
  0x36   : > { %644 = vmatprep.subr.mxu0 %v190_v16  ;;  %665 = vmatprep.subr.mxu1 %v176_v17 }
  0x37   : > { %645 = vmatpush3.msra.mxu0 %v190_v16  ;;  %646 = vmatprep.mubr.msk.f32.mxu0 %vm199_vm0, %v579_v18 }
  0x38   : > { %666 = vmatpush3.msra.mxu1 %v176_v17  ;;  %667 = vmatprep.mubr.msk.f32.mxu1 %vm199_vm0, %v174_v19 }
  0x39   : > { %647 = vmatmul.mubr.msk.f32.vlgmr.msra.gmra.mxu0 %vm199_vm0, %v580_v20  ;;  %668 = vmatmul.mubr.msk.f32.vlgmr.msra.gmra.mxu1 %vm199_vm0, %v175_v21 }
  0x3a   : > { %670 = vmatprep.subr.mxu0 %v375_v22  ;;  %688 = vmatprep.mubr.msk.f32.mxu0 %vm199_vm0, %v585_v23 }
  0x3b   : > { %671 = vmatpush3.msra.mxu0 %v375_v22 }
  0x3c   : > { %672 = vmatprep.subr.mxu0 %v374_v24 }
  0x3d   : > { %673 = vmatpush3.msra.mxu0 %v374_v24 }
  0x3e   : > { %674 = vmatprep.subr.mxu0 %v373_v25 }
  0x3f   : > { %675 = vmatpush3.msra.mxu0 %v373_v25 }
  0x40   : > { %676 = vmatprep.subr.mxu0 %v372_v26 }
  0x41   : > { %677 = vmatpush3.msra.mxu0 %v372_v26 }
  0x42   : > { %678 = vmatprep.subr.mxu0 %v371_v27 }
  0x43   : > { %679 = vmatpush3.msra.mxu0 %v371_v27 }
  0x44   : > { %680 = vmatprep.subr.mxu0 %v370_v28 }
  0x45   : > { %681 = vmatpush3.msra.mxu0 %v370_v28 }
  0x46   : > { %682 = vmatprep.subr.mxu0 %v369_v29 }
  0x47   : > { %683 = vmatpush3.msra.mxu0 %v369_v29 }
  0x48   : > { %684 = vmatprep.subr.mxu0 %v368_v30 }
  0x49   : > { %685 = vmatpush3.msra.mxu0 %v368_v30 }
  0x4a   : > { %686 = vmatprep.subr.mxu0 %v367_v31 }
  0x4b   : > { %687 = vmatpush3.msra.mxu0 %v367_v31 }
  0x4c   : > { %689 = vmatmul.mubr.msk.f32.vlgmr.msra.gmra.mxu0 %vm199_vm0, %v586_v32 }
  0xf9   : > { %v648_v33 = vpop.f32.mrf.mxu0  ;;  %v669_v34 = vpop.f32.mrf.mxu1 }
  0xfa   : > { %v359_v37 = vadd.f32 %v669_v34, %v648_v33 }
  0xfb   : > { %v272_v35 = vpop.f32.mrf.mxu0  ;;  %v353_v36 = vpop.f32.mrf.mxu1 }
  0xfc   : > { %v354_v39 = vadd.f32 %v353_v36, %v272_v35 }
 0x10c   : > { %v690_v38 = vpop.f32.mrf.mxu0 }
 0x10d   : > { %v458_v40 = vadd.f32 %v690_v38, %v359_v37 }
 0x10e   : > { %v448_v41 = vpop.f32.mrf.mxu0 }
 0x10f   : > { %460 = vst [vmem:[%s165_s18 + $0x8] sm:$0xff] %v458_v40  ;;  %v457_v42 = vadd.f32 %v448_v41, %v354_v39 }
 0x111   : > { %459 = vst [vmem:[%s165_s18] sm:$0xff] %v457_v42 }
 0x112   : > { %801 = shalt.err (!%p798_p3)
}
 0x113   : > { %s802_s3 = scalar_lea.hbm %s995_s26, 256  ;;  %s806_s6 = scalar_lea.hbm %s1044_s2, 512 }
 0x114   : > { %p803_p5 = scmp.ne.s32.totalorder %s995_s26, %s802_s3  ;;  %p807_p9 = scmp.lt.s32.totalorder %s995_s26, %s1044_s2 }
 0x115   : > { %p808_p12 = scmp.lt.s32.totalorder %s806_s6, %s802_s3 }
 0x116   : > { %p804_p6 = pnand %p803_p5, %p931_p4 }
 0x117   : > { %p809_p10 = por %p808_p12, %p807_p9 }
 0x118   : > { %p805_p7 = pneg %p804_p6 }
 0x11a   : > { %p810_p11 = pnand %p809_p10, %p805_p7 }
 0x11c   : > { %813 = shalt.err (!%p810_p11)
}
 0x11d   : > { %s874_s15 = smov 128   ;;  %s875_s16 = smov 8  }
 0x11e   : > { %696 = dma.vmem_to_hbm [thread:$0]  (%p931_p4), %s990_s20, 256, %s995_s26, %s997_s27, %s874_s15, %s874_s15, %s875_s16  }
 0x11f PF: > { %p708_p13 = scmp.ge.s32.totalorder %s868_s14, 2  ;;  %s492_s18 = sand.u32 1, %s848_s9  }
 0x120   : > { %s493_s23 = scalar_lea.sflag [#allocation4], %s492_s18 }
 0x121   : > { %p703_p0 = pnand %p708_p13, %p938_p8 }
 0x123   : > { %p704_p1 = pneg %p703_p0 }
 0x125   : > { %843 = dma.done.wait (%p704_p1), %s493_s23, 256  }
 0x126   : > { %845 = vsyncadd (%p704_p1), %s493_s23, 4294967040  ;;  %s16_s14 = sadd.s32 1, %s868_s14   ;;  %s1049_s9 = smov %s852_s10 }
 0x127   : > { %p13_p2 = scmp.ge.s32.totalorder %s16_s14, 4   ;;  %s1050_s10 = smov %s856_s11 }
 0x128   : > { %s1051_s11 = smov %s944_s22  ;;  %s1052_s12 = smov %s864_s13 }
 0x129   : > { %s1053_s13 = smov %s1055_s17  ;;  %15 = sbr.rel (!%p13_p2) target bundleno = 5 (0x5), region = 73 }
 0x12e   :  { %498 = vsyncpa [#allocation3], 1 }
 0x12f   :  { %500 = vsyncpa [#allocation3 + $0x1], 1 }
 0x130   :  { %501 = vsyncpa [#allocation4], 1 }
 0x131   :  { %503 = vsyncpa [#allocation4 + $0x1], 1 }

</bundles_post_ra>
